<compile_context>
chip_gen: v5e
topology: v5e:2x2
jax: 0.10.0
libtpu: 0.0.40
codegen_flags: <defaults>
</compile_context>

<pallas_src>
import jax
import jax.numpy as jnp
from jax.experimental import pallas as pl
from jax.experimental.pallas import tpu as pltpu


# ---------------------------------------------------------------------------
# helpers
# ---------------------------------------------------------------------------
_MAX_BM = 256    # batch tile (rows per grid step) when B is large
_MAX_TK = 2048   # D (reduction) tile
_MAX_TN = 2048   # fused-head lane tile


def _round_up(x: int, m: int) -> int:
    return (x + m - 1) // m * m


def _lane_alignment() -> int:
    """MXU-friendly lane alignment: 128 on v5e, 256 on v6e/v7x (safe default)."""
    try:
        kind = jax.devices()[0].device_kind.lower()
        if "v5 lite" in kind or "v5e" in kind or "v5lite" in kind:
            return 128
    except Exception:
        pass
    return 256


# ---------------------------------------------------------------------------
# kernel
# ---------------------------------------------------------------------------
def _fused_heads_kernel(x_ref, w_ref, b_ref, o_ref, acc_ref):
    # x_ref: (bm, tk)  f32  -- batch tile of flattened features (cast in-kernel)
    # w_ref: (tk, tn)  bf16 -- fused (all heads) weight tile, lane-dense
    # b_ref: (1,  tn)  f32  -- fused bias tile
    # o_ref: (bm, tn)  f32  -- fused logits tile (lane-dense, unmasked stores)
    # acc_ref: (bm, tn) f32 VMEM accumulator across the D-reduction grid axis
    k = pl.program_id(2)

    @pl.when(k == 0)
    def _init():
        acc_ref[...] = jnp.zeros_like(acc_ref)

    acc_ref[...] += jnp.dot(
        x_ref[...].astype(jnp.bfloat16),          # f32->bf16 cast hides under DMA
        w_ref[...],
        preferred_element_type=jnp.float32,
    )

    @pl.when(k == pl.num_programs(2) - 1)
    def _finalize():
        o_ref[...] = acc_ref[...] + b_ref[...]    # f32 epilogue (v5e-safe)


# ---------------------------------------------------------------------------
# one-time parameter prepack (NOT in the forward path)
# ---------------------------------------------------------------------------
def prepack_heads(weights, biases):
    """Fuse + repack per-position heads once.

    Args:
      weights: [P, D, K] float32.
      biases:  [P, 1, K] float32.

    Returns:
      w_packed: [Dp, Np] bfloat16 lane-dense fused weight slab.
      b_packed: [1,  Np] float32 fused bias row.
    """
    P, D, K = weights.shape
    assert biases.shape == (P, 1, K)

    lane = _lane_alignment()
    Np = _round_up(P * K, lane)
    if Np > _MAX_TN:                       # make lane dim divide the lane tile
        Np = _round_up(Np, _MAX_TN)
    Dp = D if D <= _MAX_TK else _round_up(D, _MAX_TK)

    w_fused = jnp.transpose(weights, (1, 0, 2)).reshape(D, P * K)
    w_packed = (
        jnp.zeros((Dp, Np), jnp.bfloat16)
        .at[:D, : P * K]
        .set(w_fused.astype(jnp.bfloat16))
    )
    b_packed = (
        jnp.zeros((1, Np), jnp.float32)
        .at[:, : P * K]
        .set(biases.reshape(1, P * K).astype(jnp.float32))
    )
    return w_packed, b_packed


# ---------------------------------------------------------------------------
# forward
# ---------------------------------------------------------------------------
def captcha_forward_fused(x_nchw, w_packed, b_packed, P: int, K: int):
    """Fused forward: returns logits of shape [B, P, K]."""
    B, C, H, W = x_nchw.shape
    D = C * H * W
    Dp, Np = w_packed.shape
    assert Dp >= D

    # Flattened f32 view of x; cast to bf16 happens inside the kernel.
    x_flat = x_nchw.reshape(B, D)

    # Tiling plan (collapses to a single grid step at small shapes).
    bm = B if B <= _MAX_BM else _MAX_BM
    Bp = B if bm == B else _round_up(B, bm)
    tk = Dp if Dp <= _MAX_TK else _MAX_TK
    tn = Np if Np <= _MAX_TN else _MAX_TN

    pad_rows, pad_cols = Bp - B, Dp - D
    if pad_rows or pad_cols:               # only materialized when tiling demands it
        x_flat = jnp.pad(x_flat, ((0, pad_rows), (0, pad_cols)))

    grid = (Bp // bm, Np // tn, Dp // tk)

    out = pl.pallas_call(
        _fused_heads_kernel,
        out_shape=jax.ShapeDtypeStruct((Bp, Np), jnp.float32),
        grid_spec=pltpu.PrefetchScalarGridSpec(
            num_scalar_prefetch=0,
            grid=grid,
            in_specs=[
                pl.BlockSpec((bm, tk), lambda i, j, k: (i, k)),   # x
                pl.BlockSpec((tk, tn), lambda i, j, k: (k, j)),   # fused W
                pl.BlockSpec((1, tn), lambda i, j, k: (0, j)),    # fused bias
            ],
            out_specs=pl.BlockSpec((bm, tn), lambda i, j, k: (i, j)),
            scratch_shapes=[pltpu.VMEM((bm, tn), jnp.float32)],
        ),
        compiler_params=pltpu.CompilerParams(
            dimension_semantics=("parallel", "parallel", "arbitrary"),
        ),
        cost_estimate=pl.CostEstimate(
            flops=2 * B * D * P * K,                       # true, unpadded
            transcendentals=0,
            bytes_accessed=(B * D * 4) + (Dp * Np * 2) + (Np * 4) + (B * P * K * 4),
        ),
    )(x_flat, w_packed, b_packed)

    # Per-position logits are contiguous column stripes of the fused slab.
    return out[:B, : P * K].reshape(B, P, K)


def captcha_heads(x_nchw, w_packed, b_packed, P: int, K: int):
    """BaseModel.forward contract: List of P arrays, each [B, K].

    The hot path returns one fused array; the list split is a thin wrapper
    outside the jitted forward (per perf review).
    """
    logits = captcha_forward_fused(x_nchw, w_packed, b_packed, P, K)
    return [logits[:, p, :] for p in range(P)]


# ---------------------------------------------------------------------------
# demo / correctness check
# ---------------------------------------------------------------------------
if __name__ == "__main__":
    # Small shapes consistent with the BaseModel contract: x is [B, C, H, W].
    B, C, H, W = 2, 4, 16, 16
    NUM_POSITIONS = 4   # number of captcha character positions
    NUM_CLASSES = 36    # e.g. digits + letters
    D = C * H * W

    key = jax.random.PRNGKey(0)
    kx, kw, kb = jax.random.split(key, 3)

    x = jax.random.normal(kx, (B, C, H, W), dtype=jnp.float32)
    weights = (
        jax.random.normal(kw, (NUM_POSITIONS, D, NUM_CLASSES), dtype=jnp.float32)
        * 0.02
    )
    biases = (
        jax.random.normal(kb, (NUM_POSITIONS, 1, NUM_CLASSES), dtype=jnp.float32)
        * 0.01
    )

    # One-time parameter repack (hoisted out of the forward path).
    w_packed, b_packed = prepack_heads(weights, biases)
    w_packed, b_packed = jax.block_until_ready((w_packed, b_packed))

    fwd = jax.jit(captcha_forward_fused, static_argnums=(3, 4))
    logits = fwd(x, w_packed, b_packed, NUM_POSITIONS, NUM_CLASSES)
    logits = jax.block_until_ready(logits)

    # Satisfy the List[Tensor] contract outside the hot path.
    outs = [logits[:, p, :] for p in range(NUM_POSITIONS)]

    # Reference check in plain JAX (same bf16 operand rounding, f32 accumulate).
    x_flat_bf = x.reshape(B, D).astype(jnp.bfloat16).astype(jnp.float32)
    for p in range(NUM_POSITIONS):
        w_bf = weights[p].astype(jnp.bfloat16).astype(jnp.float32)
        ref = x_flat_bf @ w_bf + biases[p]
        assert outs[p].shape == (B, NUM_CLASSES)
        assert jnp.allclose(outs[p], ref, atol=1e-2, rtol=1e-2), (
            f"mismatch at position {p}"
        )

    print("KERNEL_OK")
</pallas_src>

<mosaic_0001>
module attributes {stable_mosaic.version = 11 : i64} {
  func.func @_fused_heads_kernel(%arg0: i32, %arg1: i32, %arg2: i32, %arg3: memref<2x1024xf32, #tpu.memory_space<vmem>>, %arg4: memref<1024x256xbf16, #tpu.memory_space<vmem>>, %arg5: memref<1x256xf32, #tpu.memory_space<vmem>>, %arg6: memref<2x256xf32, #tpu.memory_space<vmem>>, %arg7: memref<2x256xf32, #tpu.memory_space<vmem>>) attributes {dimension_semantics = [#tpu.dimension_semantics<parallel>, #tpu.dimension_semantics<parallel>, #tpu.dimension_semantics<arbitrary>], iteration_bounds = array<i64: 1, 1, 1>, scalar_prefetch = 0 : i64, scratch_operands = 1 : i64, tpu.core_type = #tpu.core_type<tc>, window_params = [{transform_indices = @transform_0, window_bounds = array<i64: 2, 1024>}, {transform_indices = @transform_1, window_bounds = array<i64: 1024, 256>}, {transform_indices = @transform_2, window_bounds = array<i64: 1, 256>}, {transform_indices = @transform_3, window_bounds = array<i64: 2, 256>}]} {
    %c0_i32 = arith.constant 0 : i32
    %0 = arith.cmpi eq, %arg2, %c0_i32 : i32
    %1 = arith.extui %0 : i1 to i32
    %c0_i32_0 = arith.constant 0 : i32
    %2 = arith.cmpi ne, %1, %c0_i32_0 : i32
    scf.if %2 {
      %cst_10 = arith.constant 0.000000e+00 : f32
      %13 = vector.broadcast %cst_10 : f32 to vector<2x256xf32>
      %c0_11 = arith.constant 0 : index
      %c0_12 = arith.constant 0 : index
      %14 = vector.load %arg7[%c0_11, %c0_12] : memref<2x256xf32, #tpu.memory_space<vmem>>, vector<2x256xf32>
      tpu.vector_store %arg7[%c0_11, %c0_12], %13 {strides = array<i32>} : memref<2x256xf32, #tpu.memory_space<vmem>>, vector<2x256xf32>,
    } else {
    }
    %c0 = arith.constant 0 : index
    %c0_1 = arith.constant 0 : index
    %3 = vector.load %arg7[%c0, %c0_1] : memref<2x256xf32, #tpu.memory_space<vmem>>, vector<2x256xf32>
    %c0_2 = arith.constant 0 : index
    %c0_3 = arith.constant 0 : index
    %4 = vector.load %arg3[%c0_2, %c0_3] : memref<2x1024xf32, #tpu.memory_space<vmem>>, vector<2x1024xf32>
    %5 = arith.truncf %4 : vector<2x1024xf32> to vector<2x1024xbf16>
    %c0_4 = arith.constant 0 : index
    %c0_5 = arith.constant 0 : index
    %6 = vector.load %arg4[%c0_4, %c0_5] : memref<1024x256xbf16, #tpu.memory_space<vmem>>, vector<1024x256xbf16>
    %cst = arith.constant dense<0.000000e+00> : vector<2x256xf32>
    %7 = tpu.matmul %5, %6, %cst {dimension_numbers = #tpu.dot_dimension_numbers<[1], [0], [0], [1], [0, 0, 1, 1], [], []>} : vector<2x1024xbf16>, vector<1024x256xbf16>, vector<2x256xf32> -> vector<2x256xf32>
    %8 = arith.addf %3, %7 : vector<2x256xf32>
    %c0_6 = arith.constant 0 : index
    %c0_7 = arith.constant 0 : index
    %9 = vector.load %arg7[%c0_6, %c0_7] : memref<2x256xf32, #tpu.memory_space<vmem>>, vector<2x256xf32>
    tpu.vector_store %arg7[%c0_6, %c0_7], %8 {strides = array<i32>} : memref<2x256xf32, #tpu.memory_space<vmem>>, vector<2x256xf32>,
    %c0_i32_8 = arith.constant 0 : i32
    %10 = arith.cmpi eq, %arg2, %c0_i32_8 : i32
    %11 = arith.extui %10 : i1 to i32
    %c0_i32_9 = arith.constant 0 : i32
    %12 = arith.cmpi ne, %11, %c0_i32_9 : i32
    scf.if %12 {
      %c0_10 = arith.constant 0 : index
      %c0_11 = arith.constant 0 : index
      %13 = vector.load %arg7[%c0_10, %c0_11] : memref<2x256xf32, #tpu.memory_space<vmem>>, vector<2x256xf32>
      %c0_12 = arith.constant 0 : index
      %c0_13 = arith.constant 0 : index
      %14 = vector.load %arg5[%c0_12, %c0_13] : memref<1x256xf32, #tpu.memory_space<vmem>>, vector<1x256xf32>
      %15 = vector.broadcast %14 : vector<1x256xf32> to vector<2x256xf32>
      %16 = arith.addf %13, %15 : vector<2x256xf32>
      %c0_14 = arith.constant 0 : index
      %c0_15 = arith.constant 0 : index
      %17 = vector.load %arg6[%c0_14, %c0_15] : memref<2x256xf32, #tpu.memory_space<vmem>>, vector<2x256xf32>
      tpu.vector_store %arg6[%c0_14, %c0_15], %16 {strides = array<i32>} : memref<2x256xf32, #tpu.memory_space<vmem>>, vector<2x256xf32>,
    } else {
    }
    return
  }
  func.func @transform_0(%arg0: i32, %arg1: i32, %arg2: i32) -> (i32, i32) {
    %c0_i32 = arith.constant 0 : i32
    return %arg0, %arg2 : i32, i32
  }
  func.func @transform_1(%arg0: i32, %arg1: i32, %arg2: i32) -> (i32, i32) {
    %c0_i32 = arith.constant 0 : i32
    return %arg2, %arg1 : i32, i32
  }
  func.func @transform_2(%arg0: i32, %arg1: i32, %arg2: i32) -> (i32, i32) {
    %c0_i32 = arith.constant 0 : i32
    %c0_i32_0 = arith.constant 0 : i32
    return %c0_i32, %arg1 : i32, i32
  }
  func.func @transform_3(%arg0: i32, %arg1: i32, %arg2: i32) -> (i32, i32) {
    %c0_i32 = arith.constant 0 : i32
    return %arg0, %arg1 : i32, i32
  }
}

</mosaic_0001>

<bundles_post_ra>
// kernel: captcha_forward_fused.1
= control target key start
LH: loop header
LB: loop body
LE: loop exit
PB: predicated region body
PF: predicated region fallthrough
CT: control target
= control target key end

     0   :  { %8 = vsyncpa [#allocation4], 0  ;;  %s1739_s15 = smov [#allocation3]   ;;  %s1740_s17 = smov 128   ;;  %s1810_s0 = inlined_call_operand.vmem [shape: f32[2,1024], index: 0, kind: input, shape index: {}]   ;;  %s1811_s1 = inlined_call_operand.hbm [shape: bf16[1024,256], index: 1, kind: input, shape index: {}]   ;;  %s1812_s2 = inlined_call_operand.vmem [shape: f32[1,256], index: 2, kind: input, shape index: {}]   ;;  %s1813_s3 = inlined_call_operand.vmem [shape: f32[2,256], index: 3, kind: output, shape index: {}]  }
   0x1   :  { %s15_s14 = sshll.u32 %s1811_s1, 4  ;;  %s17_s16 = sshll.u32 %s1739_s15, 4  ;;  %s16_s14 = int_to_ptr.hbm [resolvable:$true] %s15_s14  ;;  %s18_s16 = int_to_ptr.vmem [resolvable:$true] %s17_s16 }
   0x2   :  { %s1741_s18 = smov 8  }
   0x3   :  { %23 = dma.hbm_to_vmem [thread:$0]  %s16_s14, 16384, %s18_s16, [#allocation4], %s1740_s17, %s1740_s17, %s1741_s18  }
   0x4   :  { %1737 = dma.done.wait [#allocation4], 16384  }
   0x5   :  { %1738 = vsyncadd [#allocation4], 4294950912  ;;  %v1127_v0 = vld [vmem:[#allocation3 + $0x70] sm:$0xf]  ;;  %v1596_v1 = vld [vmem:[#allocation3 + $0x74] sm:$0xf0] }
   0x6   :  { %v1191_v2 = vld [vmem:[#allocation3 + $0xf0] sm:$0xf]  ;;  %v1128_v3 = vor.u32 %v1596_v1, %v1127_v0  ;;  %v1612_v4 = vld [vmem:[#allocation3 + $0xf4] sm:$0xf0]  ;;  %v1119_v11 = vld [vmem:[#allocation3 + $0x60] sm:$0xf] }
   0x7   :  { %v1255_v5 = vld [vmem:[#allocation3 + $0x170] sm:$0xf]  ;;  %v1628_v6 = vld [vmem:[#allocation3 + $0x174] sm:$0xf0]  ;;  %v1192_v7 = vor.u32 %v1612_v4, %v1191_v2  ;;  %v1594_v13 = vld [vmem:[#allocation3 + $0x64] sm:$0xf0] }
   0x8   :  { %v1256_v8 = vor.u32 %v1628_v6, %v1255_v5  ;;  %v1319_v9 = vld [vmem:[#allocation3 + $0x1f0] sm:$0xf]  ;;  %v1644_v10 = vld [vmem:[#allocation3 + $0x1f4] sm:$0xf0]  ;;  %835 = vmatpush.bf16.msra.mxu0 %v1128_v3  ;;  %v1183_v14 = vld [vmem:[#allocation3 + $0xe0] sm:$0xf]  ;;  %v1120_v16 = vor.u32 %v1594_v13, %v1119_v11 }
   0x9   :  { %v1320_v12 = vor.u32 %v1644_v10, %v1319_v9  ;;  %v1610_v15 = vld [vmem:[#allocation3 + $0xe4] sm:$0xf0]  ;;  %848 = vmatpush.bf16.msra.mxu1 %v1192_v7  ;;  %v1247_v18 = vld [vmem:[#allocation3 + $0x160] sm:$0xf]  ;;  %v1111_v23 = vld [vmem:[#allocation3 + $0x50] sm:$0xf] }
   0xa   :  { %861 = vmatpush.bf16.msra.mxu2 %v1256_v8  ;;  %v1184_v17 = vor.u32 %v1610_v15, %v1183_v14  ;;  %v1626_v19 = vld [vmem:[#allocation3 + $0x164] sm:$0xf0]  ;;  %v1311_v20 = vld [vmem:[#allocation3 + $0x1e0] sm:$0xf]  ;;  %v1592_v24 = vld [vmem:[#allocation3 + $0x54] sm:$0xf0] }
   0xb   :  { %874 = vmatpush.bf16.msra.mxu3 %v1320_v12  ;;  %v1248_v21 = vor.u32 %v1626_v19, %v1247_v18  ;;  %v1642_v22 = vld [vmem:[#allocation3 + $0x1e4] sm:$0xf0]  ;;  %v1175_v26 = vld [vmem:[#allocation3 + $0xd0] sm:$0xf]  ;;  %v1608_v27 = vld [vmem:[#allocation3 + $0xd4] sm:$0xf0]  ;;  %v1112_v29 = vor.u32 %v1592_v24, %v1111_v23 }
   0xc   :  { %v1312_v25 = vor.u32 %v1642_v22, %v1311_v20  ;;  %v1239_v28 = vld [vmem:[#allocation3 + $0x150] sm:$0xf]  ;;  %836 = vmatpush.bf16.msra.mxu0 %v1120_v16  ;;  %v1624_v30 = vld [vmem:[#allocation3 + $0x154] sm:$0xf0]  ;;  %v1176_v33 = vor.u32 %v1608_v27, %v1175_v26  ;;  %v1103_v35 = vld [vmem:[#allocation3 + $0x40] sm:$0xf] }
   0xd   :  { %v1303_v31 = vld [vmem:[#allocation3 + $0x1d0] sm:$0xf]  ;;  %v1640_v32 = vld [vmem:[#allocation3 + $0x1d4] sm:$0xf0]  ;;  %849 = vmatpush.bf16.msra.mxu1 %v1184_v17  ;;  %v1240_v34 = vor.u32 %v1624_v30, %v1239_v28  ;;  %v1590_v36 = vld [vmem:[#allocation3 + $0x44] sm:$0xf0] }
   0xe   :  { %862 = vmatpush.bf16.msra.mxu2 %v1248_v21  ;;  %v1167_v37 = vld [vmem:[#allocation3 + $0xc0] sm:$0xf]  ;;  %v1304_v38 = vor.u32 %v1640_v32, %v1303_v31  ;;  %v1606_v39 = vld [vmem:[#allocation3 + $0xc4] sm:$0xf0]  ;;  %v1104_v44 = vor.u32 %v1590_v36, %v1103_v35  ;;  %v1095_v47 = vld [vmem:[#allocation3 + $0x30] sm:$0xf] }
   0xf   :  { %875 = vmatpush.bf16.msra.mxu3 %v1312_v25  ;;  %v1231_v40 = vld [vmem:[#allocation3 + $0x140] sm:$0xf]  ;;  %v1622_v41 = vld [vmem:[#allocation3 + $0x144] sm:$0xf0]  ;;  %v1168_v45 = vor.u32 %v1606_v39, %v1167_v37  ;;  %v1588_v48 = vld [vmem:[#allocation3 + $0x34] sm:$0xf0] }
  0x10   :  { %v1295_v42 = vld [vmem:[#allocation3 + $0x1c0] sm:$0xf]  ;;  %v1638_v43 = vld [vmem:[#allocation3 + $0x1c4] sm:$0xf0]  ;;  %837 = vmatpush.bf16.msra.mxu0 %v1112_v29  ;;  %v1232_v46 = vor.u32 %v1622_v41, %v1231_v40  ;;  %v1159_v49 = vld [vmem:[#allocation3 + $0xb0] sm:$0xf]  ;;  %v1096_v56 = vor.u32 %v1588_v48, %v1095_v47 }
  0x11   :  { %850 = vmatpush.bf16.msra.mxu1 %v1176_v33  ;;  %v1296_v50 = vor.u32 %v1638_v43, %v1295_v42  ;;  %v1604_v51 = vld [vmem:[#allocation3 + $0xb4] sm:$0xf0]  ;;  %v1223_v52 = vld [vmem:[#allocation3 + $0x130] sm:$0xf]  ;;  %v1087_v59 = vld [vmem:[#allocation3 + $0x20] sm:$0xf] }
  0x12   :  { %863 = vmatpush.bf16.msra.mxu2 %v1240_v34  ;;  %v1620_v53 = vld [vmem:[#allocation3 + $0x134] sm:$0xf0]  ;;  %v1287_v54 = vld [vmem:[#allocation3 + $0x1b0] sm:$0xf]  ;;  %v1160_v57 = vor.u32 %v1604_v51, %v1159_v49  ;;  %v1586_v60 = vld [vmem:[#allocation3 + $0x24] sm:$0xf0] }
  0x13   :  { %876 = vmatpush.bf16.msra.mxu3 %v1304_v38  ;;  %v1636_v55 = vld [vmem:[#allocation3 + $0x1b4] sm:$0xf0]  ;;  %v1224_v58 = vor.u32 %v1620_v53, %v1223_v52  ;;  %v1151_v61 = vld [vmem:[#allocation3 + $0xa0] sm:$0xf]  ;;  %v1602_v63 = vld [vmem:[#allocation3 + $0xa4] sm:$0xf0]  ;;  %v1088_v4 = vor.u32 %v1586_v60, %v1087_v59 }
  0x14   :  { %838 = vmatpush.bf16.msra.mxu0 %v1104_v44  ;;  %v1288_v62 = vor.u32 %v1636_v55, %v1287_v54  ;;  %v1215_v0 = vld [vmem:[#allocation3 + $0x120] sm:$0xf]  ;;  %v1618_v1 = vld [vmem:[#allocation3 + $0x124] sm:$0xf0]  ;;  %v1152_v5 = vor.u32 %v1602_v63, %v1151_v61  ;;  %v1079_v7 = vld [vmem:[#allocation3 + $0x10] sm:$0xf] }
  0x15   :  { %851 = vmatpush.bf16.msra.mxu1 %v1168_v45  ;;  %v1279_v2 = vld [vmem:[#allocation3 + $0x1a0] sm:$0xf]  ;;  %v1634_v3 = vld [vmem:[#allocation3 + $0x1a4] sm:$0xf0]  ;;  %v1216_v6 = vor.u32 %v1618_v1, %v1215_v0  ;;  %v1584_v8 = vld [vmem:[#allocation3 + $0x14] sm:$0xf0] }
  0x16   :  { %864 = vmatpush.bf16.msra.mxu2 %v1232_v46  ;;  %v1143_v9 = vld [vmem:[#allocation3 + $0x90] sm:$0xf]  ;;  %v1280_v10 = vor.u32 %v1634_v3, %v1279_v2  ;;  %v1600_v11 = vld [vmem:[#allocation3 + $0x94] sm:$0xf0]  ;;  %v1080_v16 = vor.u32 %v1584_v8, %v1079_v7  ;;  %v1071_v17 = vld [vmem:[#allocation3] sm:$0xf] }
  0x17   :  { %877 = vmatpush.bf16.msra.mxu3 %v1296_v50  ;;  %v1207_v12 = vld [vmem:[#allocation3 + $0x110] sm:$0xf]  ;;  %v1616_v13 = vld [vmem:[#allocation3 + $0x114] sm:$0xf0]  ;;  %v1582_v18 = vld [vmem:[#allocation3 + $0x4] sm:$0xf0]  ;;  %v1144_v19 = vor.u32 %v1600_v11, %v1143_v9 }
  0x18   :  { %839 = vmatpush.bf16.msra.mxu0 %v1096_v56  ;;  %v1271_v14 = vld [vmem:[#allocation3 + $0x190] sm:$0xf]  ;;  %v1632_v15 = vld [vmem:[#allocation3 + $0x194] sm:$0xf0]  ;;  %v1208_v20 = vor.u32 %v1616_v13, %v1207_v12  ;;  %v1135_v21 = vld [vmem:[#allocation3 + $0x80] sm:$0xf]  ;;  %v1072_v31 = vor.u32 %v1582_v18, %v1071_v17 }
  0x19   :  { %852 = vmatpush.bf16.msra.mxu1 %v1160_v57  ;;  %v1598_v22 = vld [vmem:[#allocation3 + $0x84] sm:$0xf0]  ;;  %v1199_v23 = vld [vmem:[#allocation3 + $0x100] sm:$0xf]  ;;  %v1272_v24 = vor.u32 %v1632_v15, %v1271_v14  ;;  %v1383_v28 = vld [vmem:[#allocation3 + $0x270] sm:$0xf] }
  0x1a   :  { %865 = vmatpush.bf16.msra.mxu2 %v1224_v58  ;;  %v1614_v25 = vld [vmem:[#allocation3 + $0x104] sm:$0xf0]  ;;  %v1263_v26 = vld [vmem:[#allocation3 + $0x180] sm:$0xf]  ;;  %v1660_v29 = vld [vmem:[#allocation3 + $0x274] sm:$0xf0]  ;;  %v1136_v35 = vor.u32 %v1598_v22, %v1135_v21 }
  0x1b   :  { %878 = vmatpush.bf16.msra.mxu3 %v1288_v62  ;;  %v1630_v27 = vld [vmem:[#allocation3 + $0x184] sm:$0xf0]  ;;  %v1447_v30 = vld [vmem:[#allocation3 + $0x2f0] sm:$0xf]  ;;  %v1676_v32 = vld [vmem:[#allocation3 + $0x2f4] sm:$0xf0]  ;;  %v1200_v36 = vor.u32 %v1614_v25, %v1199_v23  ;;  %v1384_v40 = vor.u32 %v1660_v29, %v1383_v28 }
  0x1c   :  { %840 = vmatpush.bf16.msra.mxu0 %v1088_v4  ;;  %v1511_v33 = vld [vmem:[#allocation3 + $0x370] sm:$0xf]  ;;  %v1692_v34 = vld [vmem:[#allocation3 + $0x374] sm:$0xf0]  ;;  %v1264_v39 = vor.u32 %v1630_v27, %v1263_v26  ;;  %v1448_v41 = vor.u32 %v1676_v32, %v1447_v30  ;;  %v1375_v43 = vld [vmem:[#allocation3 + $0x260] sm:$0xf] }
  0x1d   :  { %853 = vmatpush.bf16.msra.mxu1 %v1152_v5  ;;  %v1575_v37 = vld [vmem:[#allocation3 + $0x3f0] sm:$0xf]  ;;  %v1708_v38 = vld [vmem:[#allocation3 + $0x3f4] sm:$0xf0]  ;;  %v1512_v42 = vor.u32 %v1692_v34, %v1511_v33  ;;  %v1658_v44 = vld [vmem:[#allocation3 + $0x264] sm:$0xf0] }
  0x1e   :  { %866 = vmatpush.bf16.msra.mxu2 %v1216_v6  ;;  %v1439_v45 = vld [vmem:[#allocation3 + $0x2e0] sm:$0xf]  ;;  %v1576_v46 = vor.u32 %v1708_v38, %v1575_v37  ;;  %v1674_v47 = vld [vmem:[#allocation3 + $0x2e4] sm:$0xf0]  ;;  %v1376_v52 = vor.u32 %v1658_v44, %v1375_v43  ;;  %v1367_v53 = vld [vmem:[#allocation3 + $0x250] sm:$0xf] }
  0x1f   :  { %879 = vmatpush.bf16.msra.mxu3 %v1280_v10  ;;  %v1503_v48 = vld [vmem:[#allocation3 + $0x360] sm:$0xf]  ;;  %v1690_v49 = vld [vmem:[#allocation3 + $0x364] sm:$0xf0]  ;;  %v1656_v54 = vld [vmem:[#allocation3 + $0x254] sm:$0xf0]  ;;  %v1440_v55 = vor.u32 %v1674_v47, %v1439_v45 }
  0x20   :  { %841 = vmatpush.bf16.msra.mxu0 %v1080_v16  ;;  %v1567_v50 = vld [vmem:[#allocation3 + $0x3e0] sm:$0xf]  ;;  %v1706_v51 = vld [vmem:[#allocation3 + $0x3e4] sm:$0xf0]  ;;  %v1504_v56 = vor.u32 %v1690_v49, %v1503_v48  ;;  %v1431_v57 = vld [vmem:[#allocation3 + $0x2d0] sm:$0xf]  ;;  %v1368_v1 = vor.u32 %v1656_v54, %v1367_v53 }
  0x21   :  { %854 = vmatpush.bf16.msra.mxu1 %v1144_v19  ;;  %v1672_v58 = vld [vmem:[#allocation3 + $0x2d4] sm:$0xf0]  ;;  %v1568_v60 = vor.u32 %v1706_v51, %v1567_v50  ;;  %v1495_v61 = vld [vmem:[#allocation3 + $0x350] sm:$0xf]  ;;  %v1359_v2 = vld [vmem:[#allocation3 + $0x240] sm:$0xf] }
  0x22   :  { %867 = vmatpush.bf16.msra.mxu2 %v1208_v20  ;;  %v36_v59 = vld [vmem:[%s1810_s0] sm:$0xff]  ;;  %v1559_v63 = vld [vmem:[#allocation3 + $0x3d0] sm:$0xf]  ;;  %v1432_v3 = vor.u32 %v1672_v58, %v1431_v57  ;;  %v1654_v5 = vld [vmem:[#allocation3 + $0x244] sm:$0xf0]  ;;  %vm1046_vm0 = vcmask 1041408  }
  0x23   :  { %880 = vmatpush.bf16.msra.mxu3 %v1272_v24  ;;  %v1688_v62 = vld [vmem:[#allocation3 + $0x354] sm:$0xf0]  ;;  %40 = vst [vmem:[#allocation1] ss:$4 sm:$0xff] %v36_v59  ;;  %v1423_v6 = vld [vmem:[#allocation3 + $0x2c0] sm:$0xf]  ;;  %v1360_v15 = vor.u32 %v1654_v5, %v1359_v2 }
  0x24   :  { %842 = vmatpush.bf16.msra.mxu0 %v1072_v31  ;;  %v1704_v0 = vld [vmem:[#allocation3 + $0x3d4] sm:$0xf0]  ;;  %v1496_v4 = vor.u32 %v1688_v62, %v1495_v61  ;;  %v1670_v7 = vld [vmem:[#allocation3 + $0x2c4] sm:$0xf0]  ;;  %v1487_v9 = vld [vmem:[#allocation3 + $0x340] sm:$0xf] }
  0x25   :  { %855 = vmatpush.bf16.msra.mxu1 %v1136_v35  ;;  %v1560_v8 = vor.u32 %v1704_v0, %v1559_v63  ;;  %v1686_v10 = vld [vmem:[#allocation3 + $0x344] sm:$0xf0]  ;;  %v1551_v11 = vld [vmem:[#allocation3 + $0x3c0] sm:$0xf]  ;;  %v1351_v13 = vld [vmem:[#allocation3 + $0x230] sm:$0xf]  ;;  %v1424_v20 = vor.u32 %v1670_v7, %v1423_v6 }
  0x26   :  { %868 = vmatpush.bf16.msra.mxu2 %v1200_v36  ;;  %v1702_v12 = vld [vmem:[#allocation3 + $0x3c4] sm:$0xf0]  ;;  %v1652_v14 = vld [vmem:[#allocation3 + $0x234] sm:$0xf0]  ;;  %v1415_v16 = vld [vmem:[#allocation3 + $0x2b0] sm:$0xf]  ;;  %v1488_v21 = vor.u32 %v1686_v10, %v1487_v9 }
  0x27   :  { %881 = vmatpush.bf16.msra.mxu3 %v1264_v39  ;;  %v1668_v17 = vld [vmem:[#allocation3 + $0x2b4] sm:$0xf0]  ;;  %v1479_v18 = vld [vmem:[#allocation3 + $0x330] sm:$0xf]  ;;  %v1552_v24 = vor.u32 %v1702_v12, %v1551_v11  ;;  %v1352_v33 = vor.u32 %v1652_v14, %v1351_v13  ;;  %v1343_v36 = vld [vmem:[#allocation3 + $0x220] sm:$0xf] }
  0x28   :  { %887 = vmatpush.bf16.msrb.mxu0 %v1384_v40  ;;  %v1684_v19 = vld [vmem:[#allocation3 + $0x334] sm:$0xf0]  ;;  %v1543_v29 = vld [vmem:[#allocation3 + $0x3b0] sm:$0xf]  ;;  %v1416_v34 = vor.u32 %v1668_v17, %v1415_v16  ;;  %v1650_v37 = vld [vmem:[#allocation3 + $0x224] sm:$0xf0] }
  0x29   :  { %900 = vmatpush.bf16.msrb.mxu1 %v1448_v41  ;;  %v1700_v30 = vld [vmem:[#allocation3 + $0x3b4] sm:$0xf0]  ;;  %v1480_v35 = vor.u32 %v1684_v19, %v1479_v18  ;;  %v1407_v38 = vld [vmem:[#allocation3 + $0x2a0] sm:$0xf]  ;;  %v1666_v40 = vld [vmem:[#allocation3 + $0x2a4] sm:$0xf0]  ;;  %v1344_v45 = vor.u32 %v1650_v37, %v1343_v36 }
  0x2a   :  { %913 = vmatpush.bf16.msrb.mxu2 %v1512_v42  ;;  %v45_v22 = vld.sshfl [vmem:[#allocation1 + $0x10] sm:$0xff pattern:$0x73625140]  ;;  %v43_v23 = vld.sshfl [vmem:[#allocation1] sm:$0xff pattern:$0x73625140]  ;;  %v1544_v39 = vor.u32 %v1700_v30, %v1543_v29  ;;  %v1408_v48 = vor.u32 %v1666_v40, %v1407_v38 }
  0x2b   :  { %926 = vmatpush.bf16.msrb.mxu3 %v1576_v46  ;;  %v1769_v25 = vpack.c.bf16 %v45_v22, %v45_v22  ;;  %v1771_v26 = vpack.c.bf16 %v43_v23, %v43_v23  ;;  %v46_v27 = vld.sshfl [vmem:[#allocation1 + $0x18] sm:$0xff pattern:$0x73625140]  ;;  %v44_v28 = vld.sshfl [vmem:[#allocation1 + $0x8] sm:$0xff pattern:$0x73625140] }
  0x2c   :  { %888 = vmatpush.bf16.msrb.mxu0 %v1376_v52  ;;  %v1773_v31 = vpack.c.bf16 %v46_v27, %v46_v27  ;;  %v1775_v32 = vpack.c.bf16 %v44_v28, %v44_v28  ;;  %v1471_v41 = vld [vmem:[#allocation3 + $0x320] sm:$0xf]  ;;  %v1682_v42 = vld [vmem:[#allocation3 + $0x324] sm:$0xf0]  ;;  %v1335_v46 = vld [vmem:[#allocation3 + $0x210] sm:$0xf] }
  0x2d   :  { %901 = vmatpush.bf16.msrb.mxu1 %v1440_v55  ;;  %869 = vmatmul.bf16.vlgmr.msra.gmra.mxu2 %v1769_v25  ;;  %v1535_v43 = vld [vmem:[#allocation3 + $0x3a0] sm:$0xf]  ;;  %v1698_v44 = vld [vmem:[#allocation3 + $0x3a4] sm:$0xf0]  ;;  %v1648_v47 = vld [vmem:[#allocation3 + $0x214] sm:$0xf0]  ;;  %v1472_v49 = vor.u32 %v1682_v42, %v1471_v41 }
  0x2e   :  { %914 = vmatpush.bf16.msrb.mxu2 %v1504_v56  ;;  %843 = vmatmul.bf16.vlgmr.msra.gmra.mxu0 %v1771_v26  ;;  %v1399_v50 = vld [vmem:[#allocation3 + $0x290] sm:$0xf]  ;;  %v1664_v51 = vld [vmem:[#allocation3 + $0x294] sm:$0xf0]  ;;  %v37_v52 = vld [vmem:[%s1810_s0 + $0x8] sm:$0xff]  ;;  %v1536_v53 = vor.u32 %v1698_v44, %v1535_v43  ;;  %v1336_v59 = vor.u32 %v1648_v47, %v1335_v46 }
  0x2f   :  { %927 = vmatpush.bf16.msrb.mxu3 %v1568_v60  ;;  %856 = vmatmul.bf16.vlgmr.msra.gmra.mxu1 %v1775_v32  ;;  %v1463_v54 = vld [vmem:[#allocation3 + $0x310] sm:$0xf]  ;;  %v1680_v55 = vld [vmem:[#allocation3 + $0x314] sm:$0xf0]  ;;  %42 = vst [vmem:[#allocation1 + $0x20] ss:$4 sm:$0xff] %v37_v52  ;;  %v1400_v63 = vor.u32 %v1664_v51, %v1399_v50 }
  0x30   :  { %889 = vmatpush.bf16.msrb.mxu0 %v1368_v1  ;;  %882 = vmatmul.bf16.vlgmr.msra.gmra.mxu3 %v1773_v31  ;;  %v1527_v56 = vld [vmem:[#allocation3 + $0x390] sm:$0xf]  ;;  %v1696_v57 = vld [vmem:[#allocation3 + $0x394] sm:$0xf0]  ;;  %v1327_v58 = vld [vmem:[#allocation3 + $0x200] sm:$0xf]  ;;  %v1464_v0 = vor.u32 %v1680_v55, %v1463_v54 }
  0x31   :  { %902 = vmatpush.bf16.msrb.mxu1 %v1432_v3  ;;  %v1646_v60 = vld [vmem:[#allocation3 + $0x204] sm:$0xf0]  ;;  %v1391_v61 = vld [vmem:[#allocation3 + $0x280] sm:$0xf]  ;;  %v1595_v6 = vld [vmem:[#allocation3 + $0x74] sm:$0xf] }
  0x32   :  { %915 = vmatpush.bf16.msrb.mxu2 %v1496_v4  ;;  %v1662_v62 = vld [vmem:[#allocation3 + $0x284] sm:$0xf0]  ;;  %v1455_v1 = vld [vmem:[#allocation3 + $0x300] sm:$0xf]  ;;  %v1528_v4 = vor.u32 %v1696_v57, %v1527_v56  ;;  %v1129_v7 = vld [vmem:[#allocation3 + $0x78] sm:$0xf0]  ;;  %v1328_v11 = vor.u32 %v1646_v60, %v1327_v58 }
  0x33   :  { %928 = vmatpush.bf16.msrb.mxu3 %v1560_v8  ;;  %v1678_v2 = vld [vmem:[#allocation3 + $0x304] sm:$0xf0]  ;;  %v1519_v3 = vld [vmem:[#allocation3 + $0x380] sm:$0xf]  ;;  %v1611_v8 = vld [vmem:[#allocation3 + $0xf4] sm:$0xf] }
  0x34   :  { %890 = vmatpush.bf16.msrb.mxu0 %v1360_v15  ;;  %v1694_v5 = vld [vmem:[#allocation3 + $0x384] sm:$0xf0]  ;;  %v1193_v9 = vld [vmem:[#allocation3 + $0xf8] sm:$0xf0]  ;;  %v1627_v10 = vld [vmem:[#allocation3 + $0x174] sm:$0xf]  ;;  %v1392_v15 = vor.u32 %v1662_v62, %v1391_v61  ;;  %v1456_v16 = vor.u32 %v1678_v2, %v1455_v1 }
  0x35   :  { %903 = vmatpush.bf16.msrb.mxu1 %v1424_v20  ;;  %v1257_v12 = vld [vmem:[#allocation3 + $0x178] sm:$0xf0]  ;;  %v1643_v13 = vld [vmem:[#allocation3 + $0x1f4] sm:$0xf]  ;;  %v1593_v17 = vld [vmem:[#allocation3 + $0x64] sm:$0xf]  ;;  %v1520_v20 = vor.u32 %v1694_v5, %v1519_v3 }
  0x36   :  { %916 = vmatpush.bf16.msrb.mxu2 %v1488_v21  ;;  %v1321_v14 = vld [vmem:[#allocation3 + $0x1f8] sm:$0xf0]  ;;  %v1121_v18 = vld [vmem:[#allocation3 + $0x68] sm:$0xf0]  ;;  %v1132_v21 = vor.u32 %v1595_v6, %v1129_v7  ;;  %v1260_v27 = vor.u32 %v1627_v10, %v1257_v12  ;;  %v1609_v28 = vld [vmem:[#allocation3 + $0xe4] sm:$0xf] }
  0x37   :  { %929 = vmatpush.bf16.msrb.mxu3 %v1552_v24  ;;  %v49_v19 = vld.sshfl [vmem:[#allocation1 + $0x30] sm:$0xff pattern:$0x73625140]  ;;  %v47_v22 = vld.sshfl [vmem:[#allocation1 + $0x20] sm:$0xff pattern:$0x73625140]  ;;  %v1196_v24 = vor.u32 %v1611_v8, %v1193_v9  ;;  %v1324_v30 = vor.u32 %v1643_v13, %v1321_v14  ;;  %v1124_v41 = vor.u32 %v1593_v17, %v1121_v18 }
  0x38   :  { %891 = vmatpush.bf16.msrb.mxu0 %v1352_v33  ;;  %v50_v23 = vld.sshfl [vmem:[#allocation1 + $0x38] sm:$0xff pattern:$0x73625140]  ;;  %v48_v29 = vld.sshfl [vmem:[#allocation1 + $0x28] sm:$0xff pattern:$0x73625140]  ;;  %v1784_v36 = vpack.c.bf16 %v49_v19, %v49_v19 }
  0x39   :  { %904 = vmatpush.bf16.msrb.mxu1 %v1416_v34  ;;  %v1185_v33 = vld [vmem:[#allocation3 + $0xe8] sm:$0xf0]  ;;  %v1625_v34 = vld [vmem:[#allocation3 + $0x164] sm:$0xf]  ;;  %v1788_v40 = vpack.c.bf16 %v50_v23, %v50_v23  ;;  %v1790_v42 = vpack.c.bf16 %v48_v29, %v48_v29  ;;  %v1113_v46 = vld [vmem:[#allocation3 + $0x58] sm:$0xf0] }
  0x3a   :  { %917 = vmatpush.bf16.msrb.mxu2 %v1480_v35  ;;  %v1249_v35 = vld [vmem:[#allocation3 + $0x168] sm:$0xf0]  ;;  %v1641_v37 = vld [vmem:[#allocation3 + $0x1e4] sm:$0xf]  ;;  %v1188_v43 = vor.u32 %v1609_v28, %v1185_v33  ;;  %v1607_v47 = vld [vmem:[#allocation3 + $0xd4] sm:$0xf] }
  0x3b   :  { %930 = vmatpush.bf16.msrb.mxu3 %v1544_v39  ;;  %v1313_v38 = vld [vmem:[#allocation3 + $0x1e8] sm:$0xf0]  ;;  %v1786_v39 = vpack.c.bf16 %v47_v22, %v47_v22  ;;  %v1252_v44 = vor.u32 %v1625_v34, %v1249_v35  ;;  %v1623_v50 = vld [vmem:[#allocation3 + $0x154] sm:$0xf]  ;;  %v1241_v51 = vld [vmem:[#allocation3 + $0x158] sm:$0xf0] }
  0x3c   :  { %892 = vmatpush.bf16.msrb.mxu0 %v1344_v45  ;;  %v1591_v45 = vld [vmem:[#allocation3 + $0x54] sm:$0xf]  ;;  %v1244_v56 = vor.u32 %v1623_v50, %v1241_v51  ;;  %v1589_v57 = vld [vmem:[#allocation3 + $0x44] sm:$0xf]  ;;  %v1105_v58 = vld [vmem:[#allocation3 + $0x48] sm:$0xf0] }
  0x3d   :  { %905 = vmatpush.bf16.msrb.mxu1 %v1408_v48  ;;  %v1316_v48 = vor.u32 %v1641_v37, %v1313_v38  ;;  %v1639_v52 = vld [vmem:[#allocation3 + $0x1d4] sm:$0xf]  ;;  %v1116_v54 = vor.u32 %v1591_v45, %v1113_v46  ;;  %v1169_v61 = vld [vmem:[#allocation3 + $0xc8] sm:$0xf0]  ;;  %v1621_v62 = vld [vmem:[#allocation3 + $0x144] sm:$0xf]  ;;  %v1108_v2 = vor.u32 %v1589_v57, %v1105_v58 }
  0x3e   :  { %918 = vmatpush.bf16.msrb.mxu2 %v1472_v49  ;;  %v1177_v49 = vld [vmem:[#allocation3 + $0xd8] sm:$0xf0]  ;;  %v1297_v1 = vld [vmem:[#allocation3 + $0x1c8] sm:$0xf0]  ;;  %v1587_v5 = vld [vmem:[#allocation3 + $0x34] sm:$0xf] }
  0x3f   :  { %931 = vmatpush.bf16.msrb.mxu3 %v1536_v53  ;;  %v1305_v53 = vld [vmem:[#allocation3 + $0x1d8] sm:$0xf0]  ;;  %v1180_v55 = vor.u32 %v1607_v47, %v1177_v49  ;;  %v1603_v7 = vld [vmem:[#allocation3 + $0xb4] sm:$0xf]  ;;  %v1585_v17 = vld [vmem:[#allocation3 + $0x24] sm:$0xf] }
  0x40   :  { %893 = vmatpush.bf16.msrb.mxu0 %v1336_v59  ;;  %v1605_v59 = vld [vmem:[#allocation3 + $0xc4] sm:$0xf]  ;;  %v1308_v60 = vor.u32 %v1639_v52, %v1305_v53  ;;  %v1097_v6 = vld [vmem:[#allocation3 + $0x38] sm:$0xf0]  ;;  %v1619_v10 = vld [vmem:[#allocation3 + $0x134] sm:$0xf] }
  0x41   :  { %906 = vmatpush.bf16.msrb.mxu1 %v1400_v63  ;;  %v1233_v63 = vld [vmem:[#allocation3 + $0x148] sm:$0xf0]  ;;  %v1172_v3 = vor.u32 %v1605_v59, %v1169_v61  ;;  %v1161_v9 = vld [vmem:[#allocation3 + $0xb8] sm:$0xf0]  ;;  %v1635_v12 = vld [vmem:[#allocation3 + $0x1b4] sm:$0xf]  ;;  %v1100_v14 = vor.u32 %v1587_v5, %v1097_v6 }
  0x42   :  { %919 = vmatpush.bf16.msrb.mxu2 %v1464_v0  ;;  %v1637_v0 = vld [vmem:[#allocation3 + $0x1c4] sm:$0xf]  ;;  %v1289_v13 = vld [vmem:[#allocation3 + $0x1b8] sm:$0xf0]  ;;  %v1089_v18 = vld [vmem:[#allocation3 + $0x28] sm:$0xf0] }
  0x43   :  { %932 = vmatpush.bf16.msrb.mxu3 %v1528_v4  ;;  %v1236_v4 = vor.u32 %v1621_v62, %v1233_v63  ;;  %v1300_v8 = vor.u32 %v1637_v0, %v1297_v1  ;;  %v1601_v19 = vld [vmem:[#allocation3 + $0xa4] sm:$0xf]  ;;  %v1217_v23 = vld [vmem:[#allocation3 + $0x128] sm:$0xf0]  ;;  %v1092_v28 = vor.u32 %v1585_v17, %v1089_v18  ;;  %v1583_v33 = vld [vmem:[#allocation3 + $0x14] sm:$0xf] }
  0x44   :  { %894 = vmatpush.bf16.msrb.mxu0 %v1328_v11  ;;  %v1225_v11 = vld [vmem:[#allocation3 + $0x138] sm:$0xf0]  ;;  %v1617_v22 = vld [vmem:[#allocation3 + $0x124] sm:$0xf]  ;;  %v1599_v35 = vld [vmem:[#allocation3 + $0x94] sm:$0xf] }
  0x45   :  { %907 = vmatpush.bf16.msrb.mxu1 %v1392_v15  ;;  %v1164_v15 = vor.u32 %v1603_v7, %v1161_v9  ;;  %v1081_v34 = vld [vmem:[#allocation3 + $0x18] sm:$0xf0]  ;;  %v1581_v47 = vld [vmem:[#allocation3 + $0x4] sm:$0xf]  ;;  %v1137_v52 = vld [vmem:[#allocation3 + $0x88] sm:$0xf0] }
  0x46   :  { %920 = vmatpush.bf16.msrb.mxu2 %v1456_v16  ;;  %v1228_v16 = vor.u32 %v1619_v10, %v1225_v11  ;;  %v1145_v38 = vld [vmem:[#allocation3 + $0x98] sm:$0xf0]  ;;  %v1084_v46 = vor.u32 %v1583_v33, %v1081_v34  ;;  %v1597_v51 = vld [vmem:[#allocation3 + $0x84] sm:$0xf]  ;;  %v1265_v57 = vld [vmem:[#allocation3 + $0x188] sm:$0xf0] }
  0x47   :  { %933 = vmatpush.bf16.msrb.mxu3 %v1520_v20  ;;  %895 = vmatmul.bf16.vlgmr.msrb.gmra.mxu0 %v1786_v39  ;;  %v1292_v20 = vor.u32 %v1635_v12, %v1289_v13  ;;  %v1273_v45 = vld [vmem:[#allocation3 + $0x198] sm:$0xf0]  ;;  %v1148_v49 = vor.u32 %v1599_v35, %v1145_v38  ;;  %v1613_v53 = vld [vmem:[#allocation3 + $0x104] sm:$0xf]  ;;  %v1659_v58 = vld [vmem:[#allocation3 + $0x274] sm:$0xf]  ;;  %v1140_v1 = vor.u32 %v1597_v51, %v1137_v52 }
  0x48   :  { %939 = vmatpush.bf16.msra.mxu0 %v1132_v21  ;;  %908 = vmatmul.bf16.vlgmr.msrb.gmra.mxu1 %v1790_v42  ;;  %v1153_v21 = vld [vmem:[#allocation3 + $0xa8] sm:$0xf0]  ;;  %v1385_v59 = vld [vmem:[#allocation3 + $0x278] sm:$0xf0]  ;;  %v1691_v63 = vld [vmem:[#allocation3 + $0x374] sm:$0xf] }
  0x49   :  { %952 = vmatpush.bf16.msra.mxu1 %v1196_v24  ;;  %921 = vmatmul.bf16.vlgmr.msrb.gmra.mxu2 %v1784_v36  ;;  %v1633_v24 = vld [vmem:[#allocation3 + $0x1a4] sm:$0xf]  ;;  %v1156_v29 = vor.u32 %v1601_v19, %v1153_v21  ;;  %v1449_v62 = vld [vmem:[#allocation3 + $0x2f8] sm:$0xf0]  ;;  %v1388_v6 = vor.u32 %v1659_v58, %v1385_v59  ;;  %v1377_v10 = vld [vmem:[#allocation3 + $0x268] sm:$0xf0] }
  0x4a   :  { %965 = vmatpush.bf16.msra.mxu2 %v1260_v27  ;;  %934 = vmatmul.bf16.vlgmr.msrb.gmra.mxu3 %v1788_v40  ;;  %v1281_v27 = vld [vmem:[#allocation3 + $0x1a8] sm:$0xf0]  ;;  %v1513_v0 = vld [vmem:[#allocation3 + $0x378] sm:$0xf0]  ;;  %v1657_v9 = vld [vmem:[#allocation3 + $0x264] sm:$0xf] }
  0x4b   :  { %978 = vmatpush.bf16.msra.mxu3 %v1324_v30  ;;  %v1220_v30 = vor.u32 %v1617_v22, %v1217_v23  ;;  %v1284_v37 = vor.u32 %v1633_v24, %v1281_v27  ;;  %v1673_v11 = vld [vmem:[#allocation3 + $0x2e4] sm:$0xf]  ;;  %v1441_v13 = vld [vmem:[#allocation3 + $0x2e8] sm:$0xf0]  ;;  %v1380_v18 = vor.u32 %v1657_v9, %v1377_v10  ;;  %v1655_v21 = vld [vmem:[#allocation3 + $0x254] sm:$0xf] }
  0x4c   :  { %940 = vmatpush.bf16.msra.mxu0 %v1124_v41  ;;  %v1615_v41 = vld [vmem:[#allocation3 + $0x114] sm:$0xf]  ;;  %v1569_v17 = vld [vmem:[#allocation3 + $0x3e8] sm:$0xf0]  ;;  %v1444_v19 = vor.u32 %v1673_v11, %v1441_v13  ;;  %v1369_v22 = vld [vmem:[#allocation3 + $0x258] sm:$0xf0] }
  0x4d   :  { %953 = vmatpush.bf16.msra.mxu1 %v1188_v43  ;;  %v1209_v43 = vld [vmem:[#allocation3 + $0x118] sm:$0xf0]  ;;  %v1671_v23 = vld [vmem:[#allocation3 + $0x2d4] sm:$0xf]  ;;  %v1372_v34 = vor.u32 %v1655_v21, %v1369_v22  ;;  %v1653_v38 = vld [vmem:[#allocation3 + $0x244] sm:$0xf] }
  0x4e   :  { %966 = vmatpush.bf16.msra.mxu2 %v1252_v44  ;;  %v1631_v44 = vld [vmem:[#allocation3 + $0x194] sm:$0xf]  ;;  %v1212_v50 = vor.u32 %v1615_v41, %v1209_v43  ;;  %v1433_v27 = vld [vmem:[#allocation3 + $0x2d8] sm:$0xf0]  ;;  %v1361_v41 = vld [vmem:[#allocation3 + $0x248] sm:$0xf0] }
  0x4f   :  { %979 = vmatpush.bf16.msra.mxu3 %v1316_v48  ;;  %v1073_v48 = vld [vmem:[#allocation3 + $0x8] sm:$0xf0]  ;;  %v1561_v33 = vld [vmem:[#allocation3 + $0x3d8] sm:$0xf0]  ;;  %v1436_v35 = vor.u32 %v1671_v23, %v1433_v27  ;;  %v1667_v51 = vld [vmem:[#allocation3 + $0x2b4] sm:$0xf] }
  0x50   :  { %941 = vmatpush.bf16.msra.mxu0 %v1116_v54  ;;  %v1276_v54 = vor.u32 %v1631_v44, %v1273_v45  ;;  %v1076_v61 = vor.u32 %v1581_v47, %v1073_v48  ;;  %v1425_v44 = vld [vmem:[#allocation3 + $0x2c8] sm:$0xf0]  ;;  %v1685_v45 = vld [vmem:[#allocation3 + $0x344] sm:$0xf]  ;;  %v1647_v9 = vld [vmem:[#allocation3 + $0x214] sm:$0xf] }
  0x51   :  { %954 = vmatpush.bf16.msra.mxu1 %v1180_v55  ;;  %v1201_v55 = vld [vmem:[#allocation3 + $0x108] sm:$0xf0]  ;;  %v1701_v47 = vld [vmem:[#allocation3 + $0x3c4] sm:$0xf]  ;;  %v1337_v10 = vld [vmem:[#allocation3 + $0x218] sm:$0xf0] }
  0x52   :  { %967 = vmatpush.bf16.msra.mxu2 %v1244_v56  ;;  %v1629_v56 = vld [vmem:[#allocation3 + $0x184] sm:$0xf]  ;;  %v1663_v11 = vld [vmem:[#allocation3 + $0x294] sm:$0xf]  ;;  %v1401_v13 = vld [vmem:[#allocation3 + $0x298] sm:$0xf0] }
  0x53   :  { %980 = vmatpush.bf16.msra.mxu3 %v1308_v60  ;;  %v1675_v60 = vld [vmem:[#allocation3 + $0x2f4] sm:$0xf]  ;;  %v1268_v5 = vor.u32 %v1629_v56, %v1265_v57  ;;  %v1545_v57 = vld [vmem:[#allocation3 + $0x3b8] sm:$0xf0]  ;;  %v1645_v21 = vld [vmem:[#allocation3 + $0x204] sm:$0xf] }
  0x54   :  { %942 = vmatpush.bf16.msra.mxu0 %v1108_v2  ;;  %v1204_v2 = vor.u32 %v1613_v53, %v1201_v55  ;;  %v1452_v7 = vor.u32 %v1675_v60, %v1449_v62  ;;  %v1417_v53 = vld [vmem:[#allocation3 + $0x2b8] sm:$0xf0]  ;;  %v1699_v56 = vld [vmem:[#allocation3 + $0x3b4] sm:$0xf]  ;;  %v1345_v62 = vld [vmem:[#allocation3 + $0x228] sm:$0xf0] }
  0x55   :  { %955 = vmatpush.bf16.msra.mxu1 %v1172_v3  ;;  %v1707_v3 = vld [vmem:[#allocation3 + $0x3f4] sm:$0xf]  ;;  %v1481_v55 = vld [vmem:[#allocation3 + $0x338] sm:$0xf0]  ;;  %v1420_v59 = vor.u32 %v1667_v51, %v1417_v53  ;;  %v1329_v22 = vld [vmem:[#allocation3 + $0x208] sm:$0xf0] }
  0x56   :  { %968 = vmatpush.bf16.msra.mxu2 %v1236_v4  ;;  %v1577_v4 = vld [vmem:[#allocation3 + $0x3f8] sm:$0xf0]  ;;  %v1661_v23 = vld [vmem:[#allocation3 + $0x284] sm:$0xf]  ;;  %v1393_v27 = vld [vmem:[#allocation3 + $0x288] sm:$0xf0] }
  0x57   :  { %981 = vmatpush.bf16.msra.mxu3 %v1300_v8  ;;  %v1516_v8 = vor.u32 %v1691_v63, %v1513_v0  ;;  %v1580_v12 = vor.u32 %v1707_v3, %v1577_v4  ;;  %v1665_v63 = vld [vmem:[#allocation3 + $0x2a4] sm:$0xf]  ;;  %v1548_v0 = vor.u32 %v1699_v56, %v1545_v57  ;;  %v1473_v3 = vld [vmem:[#allocation3 + $0x328] sm:$0xf0]  ;;  %v1742_v57 = vmov 0.0  }
  0x58   :  { %943 = vmatpush.bf16.msra.mxu0 %v1100_v14  ;;  %v1689_v14 = vld [vmem:[#allocation3 + $0x364] sm:$0xf]  ;;  %34 = vst [vmem:[#allocation2] sm:$0xf] %v1742_v57 }
  0x59   :  { %956 = vmatpush.bf16.msra.mxu1 %v1164_v15  ;;  %v1505_v15 = vld [vmem:[#allocation3 + $0x368] sm:$0xf0]  ;;  %v1697_v4 = vld [vmem:[#allocation3 + $0x3a4] sm:$0xf] }
  0x5a   :  { %969 = vmatpush.bf16.msra.mxu2 %v1228_v16  ;;  %v1705_v16 = vld [vmem:[#allocation3 + $0x3e4] sm:$0xf] }
  0x5b   :  { %982 = vmatpush.bf16.msra.mxu3 %v1292_v20  ;;  %v1508_v20 = vor.u32 %v1689_v14, %v1505_v15  ;;  %v1572_v24 = vor.u32 %v1705_v16, %v1569_v17  ;;  %v1679_v14 = vld [vmem:[#allocation3 + $0x314] sm:$0xf]  ;;  %v1465_v15 = vld [vmem:[#allocation3 + $0x318] sm:$0xf0] }
  0x5c   :  { %944 = vmatpush.bf16.msra.mxu0 %v1092_v28  ;;  %v1687_v28 = vld [vmem:[#allocation3 + $0x354] sm:$0xf]  ;;  %v1529_v17 = vld [vmem:[#allocation3 + $0x398] sm:$0xf0] }
  0x5d   :  { %957 = vmatpush.bf16.msra.mxu1 %v1156_v29  ;;  %v1497_v29 = vld [vmem:[#allocation3 + $0x358] sm:$0xf0]  ;;  %v1695_v16 = vld [vmem:[#allocation3 + $0x394] sm:$0xf] }
  0x5e   :  { %970 = vmatpush.bf16.msra.mxu2 %v1220_v30  ;;  %v1703_v30 = vld [vmem:[#allocation3 + $0x3d4] sm:$0xf] }
  0x5f   :  { %983 = vmatpush.bf16.msra.mxu3 %v1284_v37  ;;  %v1500_v37 = vor.u32 %v1687_v28, %v1497_v29  ;;  %v1564_v43 = vor.u32 %v1703_v30, %v1561_v33  ;;  %v1677_v28 = vld [vmem:[#allocation3 + $0x304] sm:$0xf]  ;;  %v1457_v29 = vld [vmem:[#allocation3 + $0x308] sm:$0xf0] }
  0x60   :  { %945 = vmatpush.bf16.msra.mxu0 %v1084_v46  ;;  %v1489_v46 = vld [vmem:[#allocation3 + $0x348] sm:$0xf0]  ;;  %v1693_v30 = vld [vmem:[#allocation3 + $0x384] sm:$0xf] }
  0x61   :  { %958 = vmatpush.bf16.msra.mxu1 %v1148_v49  ;;  %v1651_v49 = vld [vmem:[#allocation3 + $0x234] sm:$0xf]  ;;  %v1521_v33 = vld [vmem:[#allocation3 + $0x388] sm:$0xf0] }
  0x62   :  { %971 = vmatpush.bf16.msra.mxu2 %v1212_v50  ;;  %v1353_v50 = vld [vmem:[#allocation3 + $0x238] sm:$0xf0] }
  0x63   :  { %984 = vmatpush.bf16.msra.mxu3 %v1276_v54  ;;  %v1683_v54 = vld [vmem:[#allocation3 + $0x334] sm:$0xf]  ;;  %v1356_v58 = vor.u32 %v1651_v49, %v1353_v50 }
  0x64   :  { %946 = vmatpush.bf16.msra.mxu0 %v1076_v61  ;;  %v1484_v60 = vor.u32 %v1683_v54, %v1481_v55  ;;  %v1649_v61 = vld [vmem:[#allocation3 + $0x224] sm:$0xf] }
  0x65   :  { %959 = vmatpush.bf16.msra.mxu1 %v1140_v1  ;;  %v1409_v1 = vld [vmem:[#allocation3 + $0x2a8] sm:$0xf0] }
  0x66   :  { %972 = vmatpush.bf16.msra.mxu2 %v1204_v2  ;;  %v1681_v2 = vld [vmem:[#allocation3 + $0x324] sm:$0xf] }
  0x67   :  { %985 = vmatpush.bf16.msra.mxu3 %v1268_v5  ;;  %947 = vmatmul.bf16.vlgmr.msra.gmra.mxu0 %v1771_v26  ;;  %v1553_v26 = vld [vmem:[#allocation3 + $0x3c8] sm:$0xf0] }
  0x68   :  { %991 = vmatpush.bf16.msrb.mxu0 %v1388_v6  ;;  %960 = vmatmul.bf16.vlgmr.msra.gmra.mxu1 %v1775_v32  ;;  %v1492_v32 = vor.u32 %v1685_v45, %v1489_v46  ;;  %v1556_v52 = vor.u32 %v1701_v47, %v1553_v26  ;;  %v1537_v5 = vld [vmem:[#allocation3 + $0x3a8] sm:$0xf0]  ;;  %v1348_v6 = vor.u32 %v1649_v61, %v1345_v62 }
  0x69   :  { %1004 = vmatpush.bf16.msrb.mxu1 %v1452_v7  ;;  %973 = vmatmul.bf16.vlgmr.msra.gmra.mxu2 %v1769_v25  ;;  %v1669_v25 = vld [vmem:[#allocation3 + $0x2c4] sm:$0xf]  ;;  %v1412_v7 = vor.u32 %v1665_v63, %v1409_v1 }
  0x6a   :  { %1017 = vmatpush.bf16.msrb.mxu2 %v1516_v8  ;;  %986 = vmatmul.bf16.vlgmr.msra.gmra.mxu3 %v1773_v31  ;;  %v1364_v31 = vor.u32 %v1653_v38, %v1361_v41  ;;  %v1428_v48 = vor.u32 %v1669_v25, %v1425_v44  ;;  %v1476_v8 = vor.u32 %v1681_v2, %v1473_v3 }
  0x6b   :  { %1030 = vmatpush.bf16.msrb.mxu3 %v1580_v12  ;;  %v1540_v12 = vor.u32 %v1697_v4, %v1537_v5  ;;  %v1524_v38 = vor.u32 %v1693_v30, %v1521_v33 }
  0x6c   :  { %992 = vmatpush.bf16.msrb.mxu0 %v1380_v18  ;;  %v1340_v18 = vor.u32 %v1647_v9, %v1337_v10 }
  0x6d   :  { %1005 = vmatpush.bf16.msrb.mxu1 %v1444_v19  ;;  %v1404_v19 = vor.u32 %v1663_v11, %v1401_v13 }
  0x6e   :  { %1018 = vmatpush.bf16.msrb.mxu2 %v1508_v20  ;;  %v1468_v20 = vor.u32 %v1679_v14, %v1465_v15  ;;  %v1055_v14 = vld [vmem:[%s1812_s2] sm:$0x3] }
  0x6f   :  { %1031 = vmatpush.bf16.msrb.mxu3 %v1572_v24  ;;  %v1532_v24 = vor.u32 %v1695_v16, %v1529_v17  ;;  %v35_v16 = vld [vmem:[#allocation2] sm:$0xf] }
  0x70   :  { %993 = vmatpush.bf16.msrb.mxu0 %v1372_v34  ;;  %v1332_v34 = vor.u32 %v1645_v21, %v1329_v22 }
  0x71   :  { %1006 = vmatpush.bf16.msrb.mxu1 %v1436_v35  ;;  %v1396_v35 = vor.u32 %v1661_v23, %v1393_v27  ;;  %v1057_v23 = vperm.slane %v1055_v14, 0 }
  0x72   :  { %1019 = vmatpush.bf16.msrb.mxu2 %v1500_v37  ;;  %v1460_v37 = vor.u32 %v1677_v28, %v1457_v29 }
  0x73   :  { %1032 = vmatpush.bf16.msrb.mxu3 %v1564_v43 }
  0x74   :  { %994 = vmatpush.bf16.msrb.mxu0 %v1364_v31 }
  0x75   :  { %1007 = vmatpush.bf16.msrb.mxu1 %v1428_v48 }
  0x76   :  { %1020 = vmatpush.bf16.msrb.mxu2 %v1492_v32 }
  0x77   :  { %1033 = vmatpush.bf16.msrb.mxu3 %v1556_v52 }
  0x78   :  { %995 = vmatpush.bf16.msrb.mxu0 %v1356_v58 }
  0x79   :  { %1008 = vmatpush.bf16.msrb.mxu1 %v1420_v59 }
  0x7a   :  { %1021 = vmatpush.bf16.msrb.mxu2 %v1484_v60 }
  0x7b   :  { %1034 = vmatpush.bf16.msrb.mxu3 %v1548_v0 }
  0x7c   :  { %996 = vmatpush.bf16.msrb.mxu0 %v1348_v6 }
  0x7d   :  { %1009 = vmatpush.bf16.msrb.mxu1 %v1412_v7 }
  0x7e   :  { %1022 = vmatpush.bf16.msrb.mxu2 %v1476_v8 }
  0x7f   :  { %1035 = vmatpush.bf16.msrb.mxu3 %v1540_v12 }
  0x80   :  { %997 = vmatpush.bf16.msrb.mxu0 %v1340_v18 }
  0x81   :  { %1010 = vmatpush.bf16.msrb.mxu1 %v1404_v19  ;;  %v1058_v19 = vperm.slane %v1055_v14, 1 }
  0x82   :  { %1023 = vmatpush.bf16.msrb.mxu2 %v1468_v20 }
  0x83   :  { %1036 = vmatpush.bf16.msrb.mxu3 %v1532_v24  ;;  %v1059_v24 = vrot.slane %v1058_v19, 6 }
  0x84   :  { %998 = vmatpush.bf16.msrb.mxu0 %v1332_v34 }
  0x85   :  { %1011 = vmatpush.bf16.msrb.mxu1 %v1396_v35  ;;  %v1060_v27 = vsel %vm1046_vm0, %v1057_v23, %v1059_v24 }
  0x86   :  { %1024 = vmatpush.bf16.msrb.mxu2 %v1460_v37 }
  0x87   :  { %1037 = vmatpush.bf16.msrb.mxu3 %v1524_v38  ;;  %999 = vmatmul.bf16.vlgmr.msrb.gmra.mxu0 %v1786_v39 }
  0x88   :  { %1012 = vmatmul.bf16.vlgmr.msrb.gmra.mxu1 %v1790_v42 }
  0x89   :  { %1025 = vmatmul.bf16.vlgmr.msrb.gmra.mxu2 %v1784_v36 }
  0x8a   :  { %1038 = vmatmul.bf16.vlgmr.msrb.gmra.mxu3 %v1788_v40 }
  0xab   :  { %v844_v41 = vpop.f32.mrf.mxu0 }
  0xac   :  { %v857_v25 = vpop.f32.mrf.mxu1 }
  0xad   :  { %v858_v43 = vadd.f32 %v857_v25, %v844_v41 }
  0xb0   :  { %v870_v44 = vpop.f32.mrf.mxu2 }
  0xb1   :  { %v871_v45 = vadd.f32 %v870_v44, %v858_v43 }
  0xb3   :  { %v883_v46 = vpop.f32.mrf.mxu3  ;;  %v846_v26 = vpop.f32.mrf.mxu0 }
  0xb4   :  { %v884_v47 = vadd.f32 %v883_v46, %v871_v45  ;;  %v859_v31 = vpop.f32.mrf.mxu1 }
  0xb8   :  { %v872_v48 = vpop.f32.mrf.mxu2 }
  0xbb   :  { %v885_v32 = vpop.f32.mrf.mxu3 }
  0xc4   :  { %v896_v49 = vpop.f32.mrf.mxu0 }
  0xc5   :  { %v897_v50 = vadd.f32 %v896_v49, %v884_v47  ;;  %v909_v39 = vpop.f32.mrf.mxu1 }
  0xc7   :  { %v910_v51 = vadd.f32 %v909_v39, %v897_v50 }
  0xcc   :  { %v922_v42 = vpop.f32.mrf.mxu2  ;;  %v898_v36 = vpop.f32.mrf.mxu0 }
  0xcd   :  { %v935_v52 = vpop.f32.mrf.mxu3  ;;  %v911_v53 = vpop.f32.mrf.mxu1  ;;  %v923_v8 = vadd.f32 %v922_v42, %v910_v51 }
  0xcf   :  { %v936_v15 = vadd.f32 %v935_v52, %v923_v8 }
  0xd4   :  { %v924_v40 = vpop.f32.mrf.mxu2 }
  0xd5   :  { %v937_v54 = vpop.f32.mrf.mxu3 }
  0xe4   :  { %v948_v55 = vpop.f32.mrf.mxu0 }
  0xe5   :  { %v961_v56 = vpop.f32.mrf.mxu1 }
  0xe6   :  { %v962_v0 = vadd.f32 %v961_v56, %v948_v55 }
  0xec   :  { %v974_v58 = vpop.f32.mrf.mxu2  ;;  %v950_v60 = vpop.f32.mrf.mxu0 }
  0xed   :  { %v987_v59 = vpop.f32.mrf.mxu3  ;;  %v963_v61 = vpop.f32.mrf.mxu1  ;;  %v975_v1 = vadd.f32 %v974_v58, %v962_v0 }
  0xef   :  { %v988_v2 = vadd.f32 %v987_v59, %v975_v1 }
  0xf4   :  { %v976_v62 = vpop.f32.mrf.mxu2 }
  0xf5   :  { %v989_v63 = vpop.f32.mrf.mxu3 }
 0x104   :  { %v1000_v3 = vpop.f32.mrf.mxu0 }
 0x105   :  { %v1013_v4 = vpop.f32.mrf.mxu1  ;;  %v1001_v5 = vadd.f32 %v1000_v3, %v988_v2 }
 0x107   :  { %v1014_v6 = vadd.f32 %v1013_v4, %v1001_v5 }
 0x10c   :  { %v1026_v7 = vpop.f32.mrf.mxu2  ;;  %v1002_v11 = vpop.f32.mrf.mxu0 }
 0x10d   :  { %v1027_v9 = vadd.f32 %v1026_v7, %v1014_v6  ;;  %v1039_v10 = vpop.f32.mrf.mxu3  ;;  %v1015_v12 = vpop.f32.mrf.mxu1 }
 0x10f   :  { %v1040_v13 = vadd.f32 %v1039_v10, %v1027_v9 }
 0x111   :  { %v1045_v17 = vrot.slane %v1040_v13, 6 }
 0x113   :  { %v1047_v18 = vsel %vm1046_vm0, %v936_v15, %v1045_v17 }
 0x114   :  { %v1049_v20 = vadd.f32 %v1047_v18, %v35_v16  ;;  %v1028_v21 = vpop.f32.mrf.mxu2 }
 0x115   :  { %v1041_v22 = vpop.f32.mrf.mxu3 }
 0x116   :  { %1050 = vst [vmem:[#allocation2] sm:$0xf] %v1049_v20 }
 0x11d   :  { %v1054_v28 = vld [vmem:[#allocation2] sm:$0xf] }
 0x11e   :  { %v1062_v29 = vadd.f32 %v1060_v27, %v1054_v28 }
 0x120   :  { %1063 = vst [vmem:[%s1813_s3] sm:$0xf] %v1062_v29 }
 0x121   :  { %1068 = vsyncpa [#allocation4], 1 }

</bundles_post_ra>
